<compile_context>
chip_gen: v7x
topology: tpu7x:2x2x1
jax: 0.10.0
libtpu: 0.0.40
codegen_flags: <defaults>
</compile_context>

<pallas_src>
import functools

import jax
import jax.numpy as jnp
from jax import lax
from jax.experimental import pallas as pl
from jax.experimental.pallas import tpu as pltpu

LEAKY_SLOPE = 0.2


def _leaky(v):
    # nn.LeakyReLU(0.2): for slope < 1, max(v, slope*v) == leaky_relu(v).
    return jnp.maximum(v, LEAKY_SLOPE * v)


def _residual_stack_kernel(x_ref, mask_ref, w3_ref, w1_ref, o_ref, *,
                           W, C, num_layers):
    """Full residual stack + final LeakyReLU for a slab of B images folded
    along the lane dimension.

    x_ref   : (1, Cin, B*H*W)    f32  channels on sublanes, flat batch+spatial on lanes
    mask_ref: (9*Cin, B*H*W)     f32  pre-expanded per-tap zero-padding masks (0/1)
    w3_ref  : (L, Cmid, 9*Cin)   f32/bf16  3x3 conv weights in im2col layout (tap-major K)
    w1_ref  : (L, Cout, Cmid)    f32/bf16  1x1 conv weights
    o_ref   : (1, Cout, B*H*W)   f32
    """
    x = x_ref[0]                                  # (Cin, lanes)
    lanes = x.shape[-1]
    m = mask_ref[...]                             # (9*Cin, lanes), loaded once
    wdt = w3_ref.dtype

    for l in range(num_layers):
        a = _leaky(x)

        # im2col: 9 circular lane rotations of the activation (XLU), masked (VPU)
        # so that wrapped lanes reproduce zero padding (including across folded
        # image boundaries); stacked along sublanes into one matmul RHS.
        rows = []
        for t in range(9):
            dy, dx = t // 3 - 1, t % 3 - 1
            d = dy * W + dx
            if d == 0:                            # center tap: no roll, no mask
                rows.append(a)
            else:
                shifted = pltpu.roll(a, (-d) % lanes, 1)
                rows.append(shifted * m[t * C:(t + 1) * C])
        patches = jnp.concatenate(rows, axis=0)   # (9*Cin, lanes)

        # 3x3 conv as ONE matmul (K = 9*Cin), f32 accumulation on the MXU.
        h = jnp.dot(w3_ref[l], patches.astype(wdt),
                    preferred_element_type=jnp.float32)   # (Cmid, lanes)
        h = _leaky(h)
        # 1x1 conv.
        y = jnp.dot(w1_ref[l], h.astype(wdt),
                    preferred_element_type=jnp.float32)   # (Cout, lanes)
        x = x + y                                          # residual (Cout == Cin)

    o_ref[0] = _leaky(x)                                   # final activation


def residual_case_forward(x_nchw, params, *, use_bf16_matmul=False,
                          images_per_step=None):
    """params: list of (w3_oihw (Cmid, Cin, 3, 3), w1_oihw (Cout, Cmid, 1, 1))
    in PyTorch weight convention (bias=False)."""
    N, C, H, W = x_nchw.shape
    HW = H * W
    L = len(params)

    # ---- weight prep (once, in the wrapper) ----
    #   w3: OIHW -> (Cmid, ky, kx, Cin) -> (Cmid, 9*Cin)  [K ordered (tap, cin)]
    #   w1: OIHW -> (Cout, Cmid)
    w3_all = jnp.stack(
        [jnp.transpose(w3, (0, 2, 3, 1)).reshape(w3.shape[0], 9 * C)
         for w3, _ in params], axis=0)                        # (L, Cmid, 9*Cin)
    w1_all = jnp.stack([w1[:, :, 0, 0] for _, w1 in params], axis=0)  # (L, Cout, Cmid)
    Cmid, Cout = w3_all.shape[1], w1_all.shape[1]
    assert Cout == C, "residual add requires num_hiddens == in_channels"
    if use_bf16_matmul:
        w3_all = w3_all.astype(jnp.bfloat16)
        w1_all = w1_all.astype(jnp.bfloat16)

    # ---- batch mapping: per-image grid on v7x (2 TCs), batch-folded lanes otherwise ----
    if images_per_step is None:
        kind = jax.devices()[0].device_kind.lower()
        images_per_step = 1 if ("v7" in kind and N > 1) else N
    B = max(1, min(int(images_per_step), N))
    while N % B:
        B -= 1
    G = N // B
    lanes = B * HW

    # (N, C, H, W) -> (G, C, B*HW): reshape + tiny transpose (no-op when B == 1).
    x_flat = (x_nchw.reshape(G, B, C, HW)
                    .transpose(0, 2, 1, 3)
                    .reshape(G, C, lanes))

    # Per-tap validity masks: circular roll by dy*W+dx followed by this mask is
    # exactly a zero-padded spatial shift. Pre-expanded to (9*Cin, lanes) so the
    # kernel never broadcasts.
    p = jnp.arange(HW)
    yy, xx = p // W, p % W
    masks = jnp.stack(
        [((yy + dy >= 0) & (yy + dy < H) & (xx + dx >= 0) & (xx + dx < W))
         for dy in (-1, 0, 1) for dx in (-1, 0, 1)],
        axis=0).astype(jnp.float32)                           # (9, HW)
    masks = jnp.tile(masks, (1, B))                           # (9, lanes)
    masks = jnp.repeat(masks, C, axis=0)                      # (9*Cin, lanes), tap-major

    kernel = functools.partial(_residual_stack_kernel, W=W, C=C, num_layers=L)

    flops = 2 * N * L * HW * (9 * C * Cmid + Cmid * Cout)
    bytes_accessed = int(4 * (x_flat.size + N * Cout * HW + masks.size)
                         + w3_all.size * w3_all.dtype.itemsize
                         + w1_all.size * w1_all.dtype.itemsize)

    out = pl.pallas_call(
        kernel,
        out_shape=jax.ShapeDtypeStruct((G, Cout, lanes), jnp.float32),
        grid_spec=pltpu.PrefetchScalarGridSpec(
            num_scalar_prefetch=0,
            grid=(G,),
            in_specs=[
                pl.BlockSpec((1, C, lanes), lambda g: (g, 0, 0)),
                pl.BlockSpec((9 * C, lanes), lambda g: (0, 0)),
                pl.BlockSpec((L, Cmid, 9 * C), lambda g: (0, 0, 0)),
                pl.BlockSpec((L, Cout, Cmid), lambda g: (0, 0, 0)),
            ],
            out_specs=pl.BlockSpec((1, Cout, lanes), lambda g: (g, 0, 0)),
        ),
        compiler_params=pltpu.CompilerParams(
            dimension_semantics=("parallel",)),
        cost_estimate=pl.CostEstimate(
            flops=flops, transcendentals=0, bytes_accessed=bytes_accessed),
    )(x_flat, masks, w3_all, w1_all)

    return (out.reshape(G, Cout, B, HW)
               .transpose(0, 2, 1, 3)
               .reshape(N, Cout, H, W))


def reference_forward(x_nchw, params):
    """Pure-JAX reference (lax.conv, NCHW/OIHW like PyTorch)."""
    x = x_nchw
    for w3, w1 in params:
        a = jnp.where(x >= 0, x, LEAKY_SLOPE * x)
        h = lax.conv_general_dilated(a, w3, (1, 1), 'SAME',
                                     dimension_numbers=('NCHW', 'OIHW', 'NCHW'))
        h = jnp.where(h >= 0, h, LEAKY_SLOPE * h)
        y = lax.conv_general_dilated(h, w1, (1, 1), 'SAME',
                                     dimension_numbers=('NCHW', 'OIHW', 'NCHW'))
        x = x + y
    return jnp.where(x >= 0, x, LEAKY_SLOPE * x)


if __name__ == "__main__":
    # Residual add requires num_hiddens == in_channels.
    in_channels = 8
    num_hiddens = 8
    num_residual_layers = 2
    num_residual_hiddens = 16
    N, H, W = 2, 16, 16

    key = jax.random.PRNGKey(0)
    kx, *kws = jax.random.split(key, 1 + 2 * num_residual_layers)
    x = jax.random.normal(kx, (N, in_channels, H, W), dtype=jnp.float32)

    params = []
    for i in range(num_residual_layers):
        # PyTorch conv weight convention: (Cout, Cin, kh, kw), bias=False.
        w3_oihw = 0.1 * jax.random.normal(
            kws[2 * i], (num_residual_hiddens, in_channels, 3, 3), jnp.float32)
        w1_oihw = 0.1 * jax.random.normal(
            kws[2 * i + 1], (num_hiddens, num_residual_hiddens, 1, 1),
            jnp.float32)
        params.append((w3_oihw, w1_oihw))

    out = residual_case_forward(x, params)
    out = jax.block_until_ready(out)

    ref = reference_forward(x, params)
    assert out.shape == (N, num_hiddens, H, W)
    assert jnp.allclose(out, ref, atol=1e-4, rtol=1e-4), float(
        jnp.max(jnp.abs(out - ref)))
    print("KERNEL_OK")
</pallas_src>

<mosaic_0001>
module attributes {stable_mosaic.version = 11 : i64} {
  func.func @_residual_stack_kernel(%arg0: i32, %arg1: memref<1x8x512xf32, #tpu.memory_space<vmem>>, %arg2: memref<72x512xf32, #tpu.memory_space<vmem>>, %arg3: memref<2x16x72xf32, #tpu.memory_space<vmem>>, %arg4: memref<2x8x16xf32, #tpu.memory_space<vmem>>, %arg5: memref<1x8x512xf32, #tpu.memory_space<vmem>>) attributes {dimension_semantics = [#tpu.dimension_semantics<parallel>], iteration_bounds = array<i64: 1>, scalar_prefetch = 0 : i64, scratch_operands = 0 : i64, tpu.core_type = #tpu.core_type<tc>, window_params = [{transform_indices = @transform_0, window_bounds = array<i64: 1, 8, 512>}, {pipeline_mode = #tpu.pipeline_mode<synchronous>, transform_indices = @transform_1, window_bounds = array<i64: 72, 512>}, {pipeline_mode = #tpu.pipeline_mode<synchronous>, transform_indices = @transform_2, window_bounds = array<i64: 2, 16, 72>}, {pipeline_mode = #tpu.pipeline_mode<synchronous>, transform_indices = @transform_3, window_bounds = array<i64: 2, 8, 16>}, {transform_indices = @transform_4, window_bounds = array<i64: 1, 8, 512>}]} {
    %c0 = arith.constant 0 : index
    %c0_0 = arith.constant 0 : index
    %c0_1 = arith.constant 0 : index
    %0 = vector.load %arg1[%c0, %c0_0, %c0_1] : memref<1x8x512xf32, #tpu.memory_space<vmem>>, vector<1x8x512xf32>
    %1 = vector.shape_cast %0 : vector<1x8x512xf32> to vector<8x512xf32>
    %c0_2 = arith.constant 0 : index
    %c0_3 = arith.constant 0 : index
    %2 = vector.load %arg2[%c0_2, %c0_3] : memref<72x512xf32, #tpu.memory_space<vmem>>, vector<72x512xf32>
    %cst = arith.constant 2.000000e-01 : f32
    %3 = vector.broadcast %cst : f32 to vector<8x512xf32>
    %4 = arith.mulf %3, %1 : vector<8x512xf32>
    %5 = arith.maximumf %1, %4 : vector<8x512xf32>
    %c17_i32 = arith.constant 17 : i32
    %6 = tpu.dynamic_rotate %5 by %c17_i32 dim 1 : vector<8x512xf32>, i32 -> vector<8x512xf32>
    %7 = vector.extract_strided_slice %2 {offsets = [0, 0], sizes = [8, 512], strides = [1, 1]} : vector<72x512xf32> to vector<8x512xf32>
    %8 = arith.mulf %6, %7 : vector<8x512xf32>
    %c16_i32 = arith.constant 16 : i32
    %9 = tpu.dynamic_rotate %5 by %c16_i32 dim 1 : vector<8x512xf32>, i32 -> vector<8x512xf32>
    %10 = vector.extract_strided_slice %2 {offsets = [8, 0], sizes = [8, 512], strides = [1, 1]} : vector<72x512xf32> to vector<8x512xf32>
    %11 = arith.mulf %9, %10 : vector<8x512xf32>
    %c15_i32 = arith.constant 15 : i32
    %12 = tpu.dynamic_rotate %5 by %c15_i32 dim 1 : vector<8x512xf32>, i32 -> vector<8x512xf32>
    %13 = vector.extract_strided_slice %2 {offsets = [16, 0], sizes = [8, 512], strides = [1, 1]} : vector<72x512xf32> to vector<8x512xf32>
    %14 = arith.mulf %12, %13 : vector<8x512xf32>
    %c1_i32 = arith.constant 1 : i32
    %15 = tpu.dynamic_rotate %5 by %c1_i32 dim 1 : vector<8x512xf32>, i32 -> vector<8x512xf32>
    %16 = vector.extract_strided_slice %2 {offsets = [24, 0], sizes = [8, 512], strides = [1, 1]} : vector<72x512xf32> to vector<8x512xf32>
    %17 = arith.mulf %15, %16 : vector<8x512xf32>
    %c511_i32 = arith.constant 511 : i32
    %18 = tpu.dynamic_rotate %5 by %c511_i32 dim 1 : vector<8x512xf32>, i32 -> vector<8x512xf32>
    %19 = vector.extract_strided_slice %2 {offsets = [40, 0], sizes = [8, 512], strides = [1, 1]} : vector<72x512xf32> to vector<8x512xf32>
    %20 = arith.mulf %18, %19 : vector<8x512xf32>
    %c497_i32 = arith.constant 497 : i32
    %21 = tpu.dynamic_rotate %5 by %c497_i32 dim 1 : vector<8x512xf32>, i32 -> vector<8x512xf32>
    %22 = vector.extract_strided_slice %2 {offsets = [48, 0], sizes = [8, 512], strides = [1, 1]} : vector<72x512xf32> to vector<8x512xf32>
    %23 = arith.mulf %21, %22 : vector<8x512xf32>
    %c496_i32 = arith.constant 496 : i32
    %24 = tpu.dynamic_rotate %5 by %c496_i32 dim 1 : vector<8x512xf32>, i32 -> vector<8x512xf32>
    %25 = vector.extract_strided_slice %2 {offsets = [56, 0], sizes = [8, 512], strides = [1, 1]} : vector<72x512xf32> to vector<8x512xf32>
    %26 = arith.mulf %24, %25 : vector<8x512xf32>
    %c495_i32 = arith.constant 495 : i32
    %27 = tpu.dynamic_rotate %5 by %c495_i32 dim 1 : vector<8x512xf32>, i32 -> vector<8x512xf32>
    %28 = vector.extract_strided_slice %2 {offsets = [64, 0], sizes = [8, 512], strides = [1, 1]} : vector<72x512xf32> to vector<8x512xf32>
    %29 = arith.mulf %27, %28 : vector<8x512xf32>
    %30 = tpu.concatenate %8, %11, %14, %17, %5, %20, %23, %26, %29 in 0 : vector<8x512xf32>, vector<8x512xf32>, vector<8x512xf32>, vector<8x512xf32>, vector<8x512xf32>, vector<8x512xf32>, vector<8x512xf32>, vector<8x512xf32>, vector<8x512xf32> -> vector<72x512xf32>
    %c0_4 = arith.constant 0 : index
    %c0_5 = arith.constant 0 : index
    %c0_6 = arith.constant 0 : index
    %31 = vector.load %arg3[%c0_4, %c0_5, %c0_6] : memref<2x16x72xf32, #tpu.memory_space<vmem>>, vector<1x16x72xf32>
    %32 = vector.shape_cast %31 : vector<1x16x72xf32> to vector<16x72xf32>
    %cst_7 = arith.constant dense<0.000000e+00> : vector<16x512xf32>
    %33 = tpu.matmul %32, %30, %cst_7 {dimension_numbers = #tpu.dot_dimension_numbers<[1], [0], [0], [1], [0, 0, 1, 1], [], []>} : vector<16x72xf32>, vector<72x512xf32>, vector<16x512xf32> -> vector<16x512xf32>
    %cst_8 = arith.constant 2.000000e-01 : f32
    %34 = vector.broadcast %cst_8 : f32 to vector<16x512xf32>
    %35 = arith.mulf %34, %33 : vector<16x512xf32>
    %36 = arith.maximumf %33, %35 : vector<16x512xf32>
    %c0_9 = arith.constant 0 : index
    %c0_10 = arith.constant 0 : index
    %c0_11 = arith.constant 0 : index
    %37 = vector.load %arg4[%c0_9, %c0_10, %c0_11] : memref<2x8x16xf32, #tpu.memory_space<vmem>>, vector<1x8x16xf32>
    %38 = vector.shape_cast %37 : vector<1x8x16xf32> to vector<8x16xf32>
    %cst_12 = arith.constant dense<0.000000e+00> : vector<8x512xf32>
    %39 = tpu.matmul %38, %36, %cst_12 {dimension_numbers = #tpu.dot_dimension_numbers<[1], [0], [0], [1], [0, 0, 1, 1], [], []>} : vector<8x16xf32>, vector<16x512xf32>, vector<8x512xf32> -> vector<8x512xf32>
    %40 = arith.addf %1, %39 : vector<8x512xf32>
    %cst_13 = arith.constant 2.000000e-01 : f32
    %41 = vector.broadcast %cst_13 : f32 to vector<8x512xf32>
    %42 = arith.mulf %41, %40 : vector<8x512xf32>
    %43 = arith.maximumf %40, %42 : vector<8x512xf32>
    %c17_i32_14 = arith.constant 17 : i32
    %44 = tpu.dynamic_rotate %43 by %c17_i32_14 dim 1 : vector<8x512xf32>, i32 -> vector<8x512xf32>
    %45 = vector.extract_strided_slice %2 {offsets = [0, 0], sizes = [8, 512], strides = [1, 1]} : vector<72x512xf32> to vector<8x512xf32>
    %46 = arith.mulf %44, %45 : vector<8x512xf32>
    %c16_i32_15 = arith.constant 16 : i32
    %47 = tpu.dynamic_rotate %43 by %c16_i32_15 dim 1 : vector<8x512xf32>, i32 -> vector<8x512xf32>
    %48 = vector.extract_strided_slice %2 {offsets = [8, 0], sizes = [8, 512], strides = [1, 1]} : vector<72x512xf32> to vector<8x512xf32>
    %49 = arith.mulf %47, %48 : vector<8x512xf32>
    %c15_i32_16 = arith.constant 15 : i32
    %50 = tpu.dynamic_rotate %43 by %c15_i32_16 dim 1 : vector<8x512xf32>, i32 -> vector<8x512xf32>
    %51 = vector.extract_strided_slice %2 {offsets = [16, 0], sizes = [8, 512], strides = [1, 1]} : vector<72x512xf32> to vector<8x512xf32>
    %52 = arith.mulf %50, %51 : vector<8x512xf32>
    %c1_i32_17 = arith.constant 1 : i32
    %53 = tpu.dynamic_rotate %43 by %c1_i32_17 dim 1 : vector<8x512xf32>, i32 -> vector<8x512xf32>
    %54 = vector.extract_strided_slice %2 {offsets = [24, 0], sizes = [8, 512], strides = [1, 1]} : vector<72x512xf32> to vector<8x512xf32>
    %55 = arith.mulf %53, %54 : vector<8x512xf32>
    %c511_i32_18 = arith.constant 511 : i32
    %56 = tpu.dynamic_rotate %43 by %c511_i32_18 dim 1 : vector<8x512xf32>, i32 -> vector<8x512xf32>
    %57 = vector.extract_strided_slice %2 {offsets = [40, 0], sizes = [8, 512], strides = [1, 1]} : vector<72x512xf32> to vector<8x512xf32>
    %58 = arith.mulf %56, %57 : vector<8x512xf32>
    %c497_i32_19 = arith.constant 497 : i32
    %59 = tpu.dynamic_rotate %43 by %c497_i32_19 dim 1 : vector<8x512xf32>, i32 -> vector<8x512xf32>
    %60 = vector.extract_strided_slice %2 {offsets = [48, 0], sizes = [8, 512], strides = [1, 1]} : vector<72x512xf32> to vector<8x512xf32>
    %61 = arith.mulf %59, %60 : vector<8x512xf32>
    %c496_i32_20 = arith.constant 496 : i32
    %62 = tpu.dynamic_rotate %43 by %c496_i32_20 dim 1 : vector<8x512xf32>, i32 -> vector<8x512xf32>
    %63 = vector.extract_strided_slice %2 {offsets = [56, 0], sizes = [8, 512], strides = [1, 1]} : vector<72x512xf32> to vector<8x512xf32>
    %64 = arith.mulf %62, %63 : vector<8x512xf32>
    %c495_i32_21 = arith.constant 495 : i32
    %65 = tpu.dynamic_rotate %43 by %c495_i32_21 dim 1 : vector<8x512xf32>, i32 -> vector<8x512xf32>
    %66 = vector.extract_strided_slice %2 {offsets = [64, 0], sizes = [8, 512], strides = [1, 1]} : vector<72x512xf32> to vector<8x512xf32>
    %67 = arith.mulf %65, %66 : vector<8x512xf32>
    %68 = tpu.concatenate %46, %49, %52, %55, %43, %58, %61, %64, %67 in 0 : vector<8x512xf32>, vector<8x512xf32>, vector<8x512xf32>, vector<8x512xf32>, vector<8x512xf32>, vector<8x512xf32>, vector<8x512xf32>, vector<8x512xf32>, vector<8x512xf32> -> vector<72x512xf32>
    %c1 = arith.constant 1 : index
    %c0_22 = arith.constant 0 : index
    %c0_23 = arith.constant 0 : index
    %69 = vector.load %arg3[%c1, %c0_22, %c0_23] : memref<2x16x72xf32, #tpu.memory_space<vmem>>, vector<1x16x72xf32>
    %70 = vector.shape_cast %69 : vector<1x16x72xf32> to vector<16x72xf32>
    %cst_24 = arith.constant dense<0.000000e+00> : vector<16x512xf32>
    %71 = tpu.matmul %70, %68, %cst_24 {dimension_numbers = #tpu.dot_dimension_numbers<[1], [0], [0], [1], [0, 0, 1, 1], [], []>} : vector<16x72xf32>, vector<72x512xf32>, vector<16x512xf32> -> vector<16x512xf32>
    %cst_25 = arith.constant 2.000000e-01 : f32
    %72 = vector.broadcast %cst_25 : f32 to vector<16x512xf32>
    %73 = arith.mulf %72, %71 : vector<16x512xf32>
    %74 = arith.maximumf %71, %73 : vector<16x512xf32>
    %c1_26 = arith.constant 1 : index
    %c0_27 = arith.constant 0 : index
    %c0_28 = arith.constant 0 : index
    %75 = vector.load %arg4[%c1_26, %c0_27, %c0_28] : memref<2x8x16xf32, #tpu.memory_space<vmem>>, vector<1x8x16xf32>
    %76 = vector.shape_cast %75 : vector<1x8x16xf32> to vector<8x16xf32>
    %cst_29 = arith.constant dense<0.000000e+00> : vector<8x512xf32>
    %77 = tpu.matmul %76, %74, %cst_29 {dimension_numbers = #tpu.dot_dimension_numbers<[1], [0], [0], [1], [0, 0, 1, 1], [], []>} : vector<8x16xf32>, vector<16x512xf32>, vector<8x512xf32> -> vector<8x512xf32>
    %78 = arith.addf %40, %77 : vector<8x512xf32>
    %cst_30 = arith.constant 2.000000e-01 : f32
    %79 = vector.broadcast %cst_30 : f32 to vector<8x512xf32>
    %80 = arith.mulf %79, %78 : vector<8x512xf32>
    %81 = arith.maximumf %78, %80 : vector<8x512xf32>
    %c0_31 = arith.constant 0 : index
    %c0_32 = arith.constant 0 : index
    %c0_33 = arith.constant 0 : index
    %82 = vector.load %arg5[%c0_31, %c0_32, %c0_33] : memref<1x8x512xf32, #tpu.memory_space<vmem>>, vector<1x8x512xf32>
    %83 = vector.shape_cast %82 : vector<1x8x512xf32> to vector<8x512xf32>
    %84 = vector.shape_cast %81 : vector<8x512xf32> to vector<1x8x512xf32>
    tpu.vector_store %arg5[%c0_31, %c0_32, %c0_33], %84 {strides = array<i32>} : memref<1x8x512xf32, #tpu.memory_space<vmem>>, vector<1x8x512xf32>,
    return
  }
  func.func @transform_0(%arg0: i32) -> (i32, i32, i32) {
    %c0_i32 = arith.constant 0 : i32
    %c0_i32_0 = arith.constant 0 : i32
    %c0_i32_1 = arith.constant 0 : i32
    return %arg0, %c0_i32, %c0_i32_0 : i32, i32, i32
  }
  func.func @transform_1(%arg0: i32) -> (i32, i32) {
    %c0_i32 = arith.constant 0 : i32
    %c0_i32_0 = arith.constant 0 : i32
    %c0_i32_1 = arith.constant 0 : i32
    return %c0_i32, %c0_i32_0 : i32, i32
  }
  func.func @transform_2(%arg0: i32) -> (i32, i32, i32) {
    %c0_i32 = arith.constant 0 : i32
    %c0_i32_0 = arith.constant 0 : i32
    %c0_i32_1 = arith.constant 0 : i32
    %c0_i32_2 = arith.constant 0 : i32
    return %c0_i32, %c0_i32_0, %c0_i32_1 : i32, i32, i32
  }
  func.func @transform_3(%arg0: i32) -> (i32, i32, i32) {
    %c0_i32 = arith.constant 0 : i32
    %c0_i32_0 = arith.constant 0 : i32
    %c0_i32_1 = arith.constant 0 : i32
    %c0_i32_2 = arith.constant 0 : i32
    return %c0_i32, %c0_i32_0, %c0_i32_1 : i32, i32, i32
  }
  func.func @transform_4(%arg0: i32) -> (i32, i32, i32) {
    %c0_i32 = arith.constant 0 : i32
    %c0_i32_0 = arith.constant 0 : i32
    %c0_i32_1 = arith.constant 0 : i32
    return %arg0, %c0_i32, %c0_i32_0 : i32, i32, i32
  }
}

</mosaic_0001>

<bundles_post_ra>
// kernel: tpu_custom_call.1
= control target key start
LH: loop header
LB: loop body
LE: loop exit
PB: predicated region body
PF: predicated region fallthrough
CT: control target
= control target key end

     0   :  { %9 = vsyncpa [#allocation3], 0  ;;  %s1891_s0 = inlined_call_operand.hbm [shape: f32[1,8,512], index: 0, kind: input, shape index: {}]   ;;  %s1892_s1 = inlined_call_operand.hbm [shape: f32[72,512], index: 1, kind: input, shape index: {}]   ;;  %s1893_s2 = inlined_call_operand.hbm [shape: f32[2,16,72], index: 2, kind: input, shape index: {}]   ;;  %s1894_s3 = inlined_call_operand.hbm [shape: f32[2,8,16], index: 3, kind: input, shape index: {}]   ;;  %s1895_s4 = inlined_call_operand.hbm [shape: f32[1,8,512], index: 4, kind: output, shape index: {}]  }
   0x1   :  { %10 = vsyncpa [#allocation6], 0 }
   0x2   :  { %11 = vsyncpa [#allocation9], 0 }
   0x3   :  { %12 = vsyncpa [#allocation4], 0  ;;  %s1306_s15 = smov [#allocation5]   ;;  %s1188_s19 = scalar_lea.hbm %s1892_s1, 4608 }
   0x4   :  { %s28_s16 = sshll.u32 %s1306_s15, 4  ;;  %p1189_p0 = scmp.ne.s32.totalorder %s1892_s1, %s1188_s19  ;;  %s29_s16 = int_to_ptr.vmem [resolvable:$true] %s28_s16 }
   0x5   :  { %p1192_p1 = scmp.lt.u32.totalorder %s1188_s19, %s1892_s1 }
   0x7   :  { %p1194_p2 = pnand %p1192_p1, %p1189_p0 }
   0x9   :  { %1197 = shalt.err (!%p1194_p2)
}
   0xa   :  { %s1198_s24 = scalar_lea.vmem %s29_s16, 4608  ;;  %p1203_p4 = scmp.lt.s32.totalorder %s29_s16, %s29_s16 }
   0xb   :  { %p1199_p3 = scmp.ne.s32.totalorder %s29_s16, %s1198_s24  ;;  %p1204_p5 = scmp.lt.s32.totalorder %s1198_s24, %s1198_s24 }
   0xd   :  { %p1205_p6 = por %p1204_p5, %p1203_p4 }
   0xf   :  { %p1206_p7 = pnand %p1205_p6, %p1199_p3 }
  0x11   :  { %1209 = shalt.err (!%p1206_p7)
}
  0x12   :  { %s1307_s25 = smov 512   ;;  %s1308_s26 = smov 32  }
  0x13   :  { %34 = dma.hbm_to_vmem [thread:$0]  %s1892_s1, 4608, %s29_s16, [#allocation6], %s1307_s25, %s1307_s25, %s1308_s26  }
  0x14   :  { %s1309_s29 = smov [#allocation2]   ;;  %s1310_s5 = smov [#allocation7]  }
  0x15   :  { %s19_s30 = sshll.u32 %s1309_s29, 4  ;;  %s40_s6 = sshll.u32 %s1310_s5, 4  ;;  %s20_s30 = int_to_ptr.vmem [resolvable:$true] %s19_s30  ;;  %s41_s6 = int_to_ptr.vmem [resolvable:$true] %s40_s6 }
  0x16   :  { %s1210_s9 = scalar_lea.hbm %s1891_s0, 512 }
  0x17   :  { %p1211_p8 = scmp.ne.s32.totalorder %s1891_s0, %s1210_s9  ;;  %p1214_p9 = scmp.lt.u32.totalorder %s1210_s9, %s1891_s0 }
  0x19   :  { %p1216_p10 = pnand %p1214_p9, %p1211_p8 }
  0x1b   :  { %1219 = shalt.err (!%p1216_p10)
}
  0x1c   :  { %s1220_s1 = scalar_lea.vmem %s20_s30, 512  ;;  %p1225_p12 = scmp.lt.s32.totalorder %s20_s30, %s20_s30 }
  0x1d   :  { %p1221_p11 = scmp.ne.s32.totalorder %s20_s30, %s1220_s1  ;;  %p1226_p13 = scmp.lt.s32.totalorder %s1220_s1, %s1220_s1 }
  0x1f   :  { %p1227_p0 = por %p1226_p13, %p1225_p12 }
  0x21   :  { %p1228_p1 = pnand %p1227_p0, %p1221_p11 }
  0x23   :  { %1231 = shalt.err (!%p1228_p1)
}
  0x24   :  { %22 = dma.hbm_to_vmem [thread:$0]  %s1891_s0, 512, %s20_s30, [#allocation3]  }
  0x25   :  { %s1232_s18 = scalar_lea.hbm %s1893_s2, 512 }
  0x26   :  { %p1233_p2 = scmp.ne.s32.totalorder %s1893_s2, %s1232_s18  ;;  %p1236_p3 = scmp.lt.u32.totalorder %s1232_s18, %s1893_s2 }
  0x28   :  { %p1238_p4 = pnand %p1236_p3, %p1233_p2 }
  0x2a   :  { %1241 = shalt.err (!%p1238_p4)
}
  0x2b   :  { %s1242_s23 = scalar_lea.vmem %s41_s6, 512  ;;  %p1247_p6 = scmp.lt.s32.totalorder %s41_s6, %s41_s6 }
  0x2c   :  { %p1243_p5 = scmp.ne.s32.totalorder %s41_s6, %s1242_s23  ;;  %p1248_p7 = scmp.lt.s32.totalorder %s1242_s23, %s1242_s23 }
  0x2e   :  { %p1249_p8 = por %p1248_p7, %p1247_p6 }
  0x30   :  { %p1250_p9 = pnand %p1249_p8, %p1243_p5 }
  0x32   :  { %1253 = shalt.err (!%p1250_p9)
}
  0x33   :  { %s1311_s0 = smov 128   ;;  %s1312_s24 = smov 8  }
  0x34   :  { %46 = dma.hbm_to_vmem [thread:$0]  %s1893_s2, 512, %s41_s6, [#allocation6], %s1311_s0, %s1311_s0, %s1312_s24  }
  0x35   :  { %s1313_s27 = smov [#allocation8]   ;;  %s1254_s5 = scalar_lea.hbm %s1894_s3, 256 }
  0x36   :  { %s52_s28 = sshll.u32 %s1313_s27, 4  ;;  %p1255_p10 = scmp.ne.s32.totalorder %s1894_s3, %s1254_s5  ;;  %s53_s28 = int_to_ptr.vmem [resolvable:$true] %s52_s28 }
  0x37   :  { %p1258_p11 = scmp.lt.u32.totalorder %s1254_s5, %s1894_s3 }
  0x39   :  { %p1260_p12 = pnand %p1258_p11, %p1255_p10 }
  0x3b   :  { %1263 = shalt.err (!%p1260_p12)
}
  0x3c   :  { %s1264_s11 = scalar_lea.vmem %s53_s28, 256  ;;  %p1269_p0 = scmp.lt.s32.totalorder %s53_s28, %s53_s28 }
  0x3d   :  { %p1265_p13 = scmp.ne.s32.totalorder %s53_s28, %s1264_s11  ;;  %p1270_p1 = scmp.lt.s32.totalorder %s1264_s11, %s1264_s11 }
  0x3f   :  { %p1271_p2 = por %p1270_p1, %p1269_p0 }
  0x41   :  { %p1272_p3 = pnand %p1271_p2, %p1265_p13 }
  0x43   :  { %1275 = shalt.err (!%p1272_p3)
}
  0x44   :  { %58 = dma.hbm_to_vmem [thread:$0]  %s1894_s3, 256, %s53_s28, [#allocation9], %s1311_s0, %s1311_s0, %s1312_s24  }
  0x45   :  { %1298 = dma.done.wait [#allocation3], 512  }
  0x46   :  { %1299 = vsyncadd [#allocation3], 4294966784 }
  0x47   :  { %1300 = dma.done.wait [#allocation6], 5120  }
  0x48   :  { %1301 = vsyncadd [#allocation6], 4294962176 }
  0x49   :  { %1302 = dma.done.wait [#allocation9], 256  }
  0x4a   :  { %1303 = vsyncadd [#allocation9], 4294967040  ;;  %v1397_v0 = vld [vmem:[#allocation2 + $0x10] sm:$0xff]  ;;  %v1399_v1 = vld [vmem:[#allocation2] sm:$0xff]  ;;  %s1314_s3 = smov 17   ;;  %s1315_s12 = smov 16   ;;  %v123_v13 = vlaneseq }
  0x4b   :  { %v1401_v2 = vld [vmem:[#allocation2 + $0x18] sm:$0xff]  ;;  %v109_v3 = vmul.f32 0.2, %v1397_v0  ;;  %v107_v4 = vmul.f32 0.2, %v1399_v1  ;;  %v1406_v6 = vld [vmem:[#allocation2 + $0x8] sm:$0xff] }
  0x4c   :  { %v110_v5 = vmul.f32 0.2, %v1401_v2  ;;  %v108_v9 = vmul.f32 0.2, %v1406_v6  ;;  %s1316_s13 = smov 15   ;;  %s1317_s1 = smov 1  }
  0x4d   :  { %v1409_v7 = vmax.f32 %v1397_v0, %v109_v3  ;;  %v1412_v8 = vmax.f32 %v1399_v1, %v107_v4  ;;  %s1318_s14 = smov 127   ;;  %s1319_s15 = smov 113   ;;  %v1896_v12 = vmov 0.0   ;;  %v1487_v16 = vand.u32 127, %v123_v13  ;;  %v1493_v20 = vld [vmem:[#allocation5 + $0x8] sm:$0xff]  ;;  %v1497_v24 = vld [vmem:[#allocation5] sm:$0xff] }
  0x4e   :  { %v1420_v10 = vmax.f32 %v1401_v2, %v110_v5  ;;  %v1423_v11 = vmax.f32 %v1406_v6, %v108_v9  ;;  %s1320_s16 = smov 112   ;;  %326 = vmatprep.mubr.f32.mxu0 %v1896_v12  ;;  %403 = vmatprep.mubr.f32.mxu1 %v1896_v12  ;;  %s1322_s17 = smov 111   ;;  %v1495_v21 = vld [vmem:[#allocation5 + $0x28] sm:$0xff]  ;;  %v1503_v27 = vld [vmem:[#allocation5 + $0x10] sm:$0xff]  ;;  %v1507_v29 = vld [vmem:[#allocation5 + $0x20] sm:$0xff]  ;;  %vm255_vm8 = vcmask 588800  }
  0x4f   :  { %119 = vrot.lane.b32.xlu1 %v1409_v7, %s1314_s3  ;;  %115 = vrot.lane.b32.xlu0 %v1412_v8, %s1314_s3  ;;  %vm125_vm0 = vcmp.lt.s32.totalorder %v1487_v16, 17  ;;  %vm142_vm1 = vcmp.lt.s32.totalorder %v1487_v16, 16  ;;  %v1513_v33 = vld [vmem:[#allocation5 + $0x30] sm:$0xff]  ;;  %v1515_v34 = vld [vmem:[#allocation5 + $0x18] sm:$0xff]  ;;  %vm159_vm2 = vcmp.lt.s32.totalorder %v1487_v16, 15  ;;  %vm176_vm3 = vcmp.lt.s32.totalorder %v1487_v16, 1 }
  0x50   :  { %v1517_v35 = vld [vmem:[#allocation5 + $0x38] sm:$0xff]  ;;  %v1533_v55 = vld [vmem:[#allocation5 + $0x48] sm:$0xff]  ;;  %v1539_v60 = vld [vmem:[#allocation5 + $0x40] sm:$0xff]  ;;  %vm193_vm4 = vcmp.lt.s32.totalorder %v1487_v16, 127  ;;  %vm227_vm5 = vcmp.lt.s32.totalorder %v1487_v16, 112  ;;  %vm210_vm6 = vcmp.lt.s32.totalorder %v1487_v16, 113 }
  0x51   :  { %v1537_v57 = vld [vmem:[#allocation5 + $0x68] sm:$0xff]  ;;  %v1546_v3 = vld [vmem:[#allocation5 + $0x50] sm:$0xff]  ;;  %v1548_v4 = vld [vmem:[#allocation5 + $0x58] sm:$0xff]  ;;  %vm244_vm7 = vcmp.lt.s32.totalorder %v1487_v16, 111  ;;  %vm433_vm9 = vcmask 130048   ;;  %s1323_s18 = smov [#allocation10]  }
  0x52   :  { %s1067_s19 = sshll.u32 %s1323_s18, 4  ;;  %s1068_s19 = int_to_ptr.vmem [resolvable:$true] %s1067_s19 }
  0x53   :  { %121 = vrot.lane.b32.xlu1 %v1420_v10, %s1314_s3  ;;  %117 = vrot.lane.b32.xlu0 %v1423_v11, %s1314_s3  ;;  %s1276_s20 = scalar_lea.vmem %s1068_s19, 512  ;;  %p1281_p5 = scmp.lt.s32.totalorder %s1068_s19, %s1068_s19 }
  0x54   :  { %p1277_p4 = scmp.ne.s32.totalorder %s1068_s19, %s1276_s20  ;;  %p1282_p6 = scmp.lt.s32.totalorder %s1276_s20, %s1276_s20 }
  0x56   :  { %p1283_p7 = por %p1282_p6, %p1281_p5 }
  0x57   :  { %136 = vrot.lane.b32.xlu1 %v1423_v11, %s1315_s12  ;;  %134 = vrot.lane.b32.xlu0 %v1412_v8, %s1315_s12 }
  0x58   :  { %p1284_p8 = pnand %p1283_p7, %p1277_p4 }
  0x5b   :  { %140 = vrot.lane.b32.xlu1 %v1420_v10, %s1315_s12  ;;  %138 = vrot.lane.b32.xlu0 %v1409_v7, %s1315_s12 }
  0x5f   :  { %153 = vrot.lane.b32.xlu1 %v1423_v11, %s1316_s13  ;;  %151 = vrot.lane.b32.xlu0 %v1412_v8, %s1316_s13 }
  0x63   :  { %157 = vrot.lane.b32.xlu1 %v1420_v10, %s1316_s13  ;;  %155 = vrot.lane.b32.xlu0 %v1409_v7, %s1316_s13 }
  0x67   :  { %170 = vrot.lane.b32.xlu1 %v1423_v11, %s1317_s1  ;;  %168 = vrot.lane.b32.xlu0 %v1412_v8, %s1317_s1 }
  0x6b   :  { %174 = vrot.lane.b32.xlu1 %v1420_v10, %s1317_s1  ;;  %172 = vrot.lane.b32.xlu0 %v1409_v7, %s1317_s1 }
  0x6f   :  { %187 = vrot.lane.b32.xlu1 %v1423_v11, %s1318_s14  ;;  %185 = vrot.lane.b32.xlu0 %v1412_v8, %s1318_s14 }
  0x73   :  { %191 = vrot.lane.b32.xlu1 %v1420_v10, %s1318_s14  ;;  %189 = vrot.lane.b32.xlu0 %v1409_v7, %s1318_s14 }
  0x77   :  { %204 = vrot.lane.b32.xlu1 %v1423_v11, %s1319_s15  ;;  %202 = vrot.lane.b32.xlu0 %v1412_v8, %s1319_s15 }
  0x7b   :  { %208 = vrot.lane.b32.xlu1 %v1420_v10, %s1319_s15  ;;  %206 = vrot.lane.b32.xlu0 %v1409_v7, %s1319_s15 }
  0x7f   :  { %221 = vrot.lane.b32.xlu1 %v1423_v11, %s1320_s16  ;;  %219 = vrot.lane.b32.xlu0 %v1412_v8, %s1320_s16 }
  0x83   :  { %225 = vrot.lane.b32.xlu1 %v1420_v10, %s1320_s16  ;;  %223 = vrot.lane.b32.xlu0 %v1409_v7, %s1320_s16 }
  0x87   :  { %238 = vrot.lane.b32.xlu1 %v1423_v11, %s1322_s17  ;;  %236 = vrot.lane.b32.xlu0 %v1412_v8, %s1322_s17 }
  0x8b   :  { %242 = vrot.lane.b32.xlu1 %v1420_v10, %s1322_s17  ;;  %240 = vrot.lane.b32.xlu0 %v1409_v7, %s1322_s17 }
  0xc1   :  { %v120_v14 = vpop.permute.xlu1 %119  ;;  %v116_v15 = vpop.permute.xlu0 %115 }
  0xc5   :  { %v122_v17 = vpop.permute.xlu1 %121  ;;  %v118_v18 = vpop.permute.xlu0 %117 }
  0xc6   :  { %v128_v19 = vsel %vm125_vm0, %v116_v15, %v118_v18  ;;  %v129_v25 = vsel %vm125_vm0, %v122_v17, %v116_v15  ;;  %v127_v28 = vsel %vm125_vm0, %v118_v18, %v120_v14  ;;  %v126_v32 = vsel %vm125_vm0, %v120_v14, %v122_v17  ;;  %v1555_v14 = vld [vmem:[#allocation5 + $0x60] sm:$0xff]  ;;  %v1557_v15 = vld [vmem:[#allocation5 + $0x70] sm:$0xff]  ;;  %v1559_v17 = vld [vmem:[#allocation5 + $0x78] sm:$0xff] }
  0xc7   :  { %v131_v30 = vmul.f32 %v128_v19, %v1493_v20  ;;  %v130_v36 = vmul.f32 %v129_v25, %v1497_v24  ;;  %v132_v40 = vmul.f32 %v127_v28, %v1503_v27  ;;  %v133_v46 = vmul.f32 %v126_v32, %v1515_v34 }
  0xc9   :  { %v137_v22 = vpop.permute.xlu1 %136  ;;  %v135_v23 = vpop.permute.xlu0 %134 }
  0xca   :  { %v145_v26 = vsel %vm142_vm1, %v135_v23, %v137_v22 }
  0xcb   :  { %v148_v31 = vmul.f32 %v145_v26, %v1495_v21 }
  0xcd   :  { %v141_v37 = vpop.permute.xlu1 %140  ;;  %v139_v38 = vpop.permute.xlu0 %138  ;;  %v1090_v39 = vpack.c.bf16 %v148_v31, %v131_v30 }
  0xce   :  { %v146_v41 = vsel %vm142_vm1, %v141_v37, %v135_v23  ;;  %v143_v42 = vsel %vm142_vm1, %v139_v38, %v141_v37  ;;  %v144_v43 = vsel %vm142_vm1, %v137_v22, %v139_v38 }
  0xcf   :  { %v147_v44 = vmul.f32 %v146_v41, %v1507_v29  ;;  %v149_v45 = vmul.f32 %v144_v43, %v1513_v33  ;;  %1091 = vmatprep.subr.bf16.mxu0 %v1090_v39  ;;  %v150_v47 = vmul.f32 %v143_v42, %v1517_v35  ;;  %v1574_v43 = vld [vmem:[#allocation5 + $0xa0] sm:$0xff] }
  0xd1   :  { %v154_v48 = vpop.permute.xlu1 %153  ;;  %v152_v49 = vpop.permute.xlu0 %151  ;;  %v1092_v50 = vpack.c.bf16 %v147_v44, %v130_v36  ;;  %v1106_v51 = vpack.c.bf16 %v150_v47, %v133_v46  ;;  %v1108_v52 = vpack.c.bf16 %v149_v45, %v132_v40  ;;  %v1578_v45 = vld [vmem:[#allocation5 + $0xb8] sm:$0xff]  ;;  %v1580_v46 = vld [vmem:[#allocation5 + $0xa8] sm:$0xff]  ;;  %v1582_v47 = vld [vmem:[#allocation5 + $0xb0] sm:$0xff] }
  0xd2   :  { %v162_v56 = vsel %vm159_vm2, %v152_v49, %v154_v48 }
  0xd3   :  { %1093 = vmatpush1.bf16.msra.mxu0 %v1092_v50  ;;  %1107 = vmatprep.subr.bf16.mxu1 %v1106_v51  ;;  %v165_v63 = vmul.f32 %v162_v56, %v1533_v55 }
  0xd4   :  { %1109 = vmatpush1.bf16.msra.mxu1 %v1108_v52 }
  0xd5   :  { %v158_v53 = vpop.permute.xlu1 %157  ;;  %v156_v54 = vpop.permute.xlu0 %155 }
  0xd6   :  { %v163_v61 = vsel %vm159_vm2, %v158_v53, %v152_v49  ;;  %v161_v5 = vsel %vm159_vm2, %v154_v48, %v156_v54  ;;  %v160_v13 = vsel %vm159_vm2, %v156_v54, %v158_v53 }
  0xd7   :  { %v164_v18 = vmul.f32 %v163_v61, %v1539_v60  ;;  %v166_v25 = vmul.f32 %v161_v5, %v1546_v3  ;;  %v167_v31 = vmul.f32 %v160_v13, %v1548_v4 }
  0xd9   :  { %v171_v58 = vpop.permute.xlu1 %170  ;;  %v169_v59 = vpop.permute.xlu0 %168 }
  0xda   :  { %v179_v62 = vsel %vm176_vm3, %v169_v59, %v171_v58 }
  0xdb   :  { %v182_v9 = vmul.f32 %v179_v62, %v1537_v57 }
  0xdd   :  { %v175_v19 = vpop.permute.xlu1 %174  ;;  %v173_v22 = vpop.permute.xlu0 %172  ;;  %v1094_v23 = vpack.c.bf16 %v182_v9, %v165_v63 }
  0xde   :  { %v180_v26 = vsel %vm176_vm3, %v175_v19, %v169_v59  ;;  %v177_v28 = vsel %vm176_vm3, %v173_v22, %v175_v19  ;;  %v178_v30 = vsel %vm176_vm3, %v171_v58, %v173_v22 }
  0xdf   :  { %v181_v32 = vmul.f32 %v180_v26, %v1555_v14  ;;  %v183_v36 = vmul.f32 %v178_v30, %v1557_v15  ;;  %v184_v37 = vmul.f32 %v177_v28, %v1559_v17  ;;  %1095 = vmatprep.subr.bf16.mxu0 %v1094_v23  ;;  %v1600_v23 = vld [vmem:[#allocation5 + $0xd8] sm:$0xff] }
  0xe0   :  { %v1616_v30 = vld [vmem:[#allocation5 + $0xf8] sm:$0xff] }
  0xe1   :  { %v188_v38 = vpop.permute.xlu1 %187  ;;  %v186_v39 = vpop.permute.xlu0 %185  ;;  %v1096_v40 = vpack.c.bf16 %v181_v32, %v164_v18  ;;  %v1110_v41 = vpack.c.bf16 %v184_v37, %v167_v31  ;;  %v1112_v42 = vpack.c.bf16 %v183_v36, %v166_v25  ;;  %v1610_v25 = vld [vmem:[#allocation5 + $0xe0] sm:$0xff]  ;;  %v1618_v31 = vld [vmem:[#allocation5 + $0xe8] sm:$0xff]  ;;  %v1620_v32 = vld [vmem:[#allocation5 + $0xf0] sm:$0xff] }
  0xe2   :  { %v196_v44 = vsel %vm193_vm4, %v186_v39, %v188_v38  ;;  %v1622_v36 = vld [vmem:[#allocation5 + $0xc0] sm:$0xff] }
  0xe3   :  { %1097 = vmatpush1.bf16.msra.mxu0 %v1096_v40  ;;  %1111 = vmatprep.subr.bf16.mxu1 %v1110_v41  ;;  %v198_v50 = vmul.f32 %v196_v44, %v1574_v43 }
  0xe4   :  { %1113 = vmatpush1.bf16.msra.mxu1 %v1112_v42 }
  0xe5   :  { %v192_v48 = vpop.permute.xlu1 %191  ;;  %v190_v49 = vpop.permute.xlu0 %189  ;;  %v1100_v9 = vpack.c.bf16 %v198_v50, %v1412_v8 }
  0xe6   :  { %v197_v51 = vsel %vm193_vm4, %v192_v48, %v186_v39  ;;  %v194_v52 = vsel %vm193_vm4, %v190_v49, %v192_v48  ;;  %v195_v53 = vsel %vm193_vm4, %v188_v38, %v190_v49 }
  0xe7   :  { %v201_v54 = vmul.f32 %v197_v51, %v1578_v45  ;;  %v199_v56 = vmul.f32 %v195_v53, %v1580_v46  ;;  %v200_v58 = vmul.f32 %v194_v52, %v1582_v47 }
  0xe9   :  { %v205_v59 = vpop.permute.xlu1 %204  ;;  %v203_v61 = vpop.permute.xlu0 %202  ;;  %v1098_v62 = vpack.c.bf16 %v199_v56, %v1423_v11  ;;  %v1114_v63 = vpack.c.bf16 %v201_v54, %v1420_v10  ;;  %v1116_v5 = vpack.c.bf16 %v200_v58, %v1409_v7  ;;  %v1604_v7 = vld [vmem:[#allocation5 + $0xc8] sm:$0xff]  ;;  %v1608_v11 = vld [vmem:[#allocation5 + $0xd0] sm:$0xff] }
  0xea   :  { %v213_v37 = vsel %vm210_vm6, %v203_v61, %v205_v59 }
  0xeb   :  { %1099 = vmatprep.subr.bf16.mxu0 %v1098_v62  ;;  %1115 = vmatprep.subr.bf16.mxu1 %v1114_v63  ;;  %v215_v54 = vmul.f32 %v213_v37, %v1622_v36 }
  0xec   :  { %1101 = vmatpush1.bf16.msra.mxu0 %v1100_v9  ;;  %1117 = vmatpush1.bf16.msra.mxu1 %v1116_v5  ;;  %v1641_v5 = vld [vmem:[#allocation5 + $0x118] sm:$0xff]  ;;  %v1643_v9 = vld [vmem:[#allocation5 + $0x108] sm:$0xff] }
  0xed   :  { %v209_v13 = vpop.permute.xlu1 %208  ;;  %v207_v18 = vpop.permute.xlu0 %206  ;;  %1900 = vst [vmem:[#allocation15_spill] sm:$0xff] %v1641_v5 }
  0xee   :  { %v214_v10 = vsel %vm210_vm6, %v209_v13, %v203_v61  ;;  %v212_v8 = vsel %vm210_vm6, %v205_v59, %v207_v18  ;;  %v211_v28 = vsel %vm210_vm6, %v207_v18, %v209_v13  ;;  %v1645_v13 = vld [vmem:[#allocation5 + $0x110] sm:$0xff]  ;;  %v1647_v18 = vld [vmem:[#allocation5 + $0x100] sm:$0xff] }
  0xef   :  { %v218_v38 = vmul.f32 %v214_v10, %v1600_v23  ;;  %v216_v39 = vmul.f32 %v212_v8, %v1604_v7  ;;  %v217_v50 = vmul.f32 %v211_v28, %v1608_v11  ;;  %1901 = vst [vmem:[#allocation16_spill] sm:$0xff] %v1645_v13 }
  0xf1   :  { %v222_v19 = vpop.permute.xlu1 %221  ;;  %v220_v22 = vpop.permute.xlu0 %219 }
  0xf2   :  { %v230_v26 = vsel %vm227_vm5, %v220_v22, %v222_v19 }
  0xf3   :  { %v232_v42 = vmul.f32 %v230_v26, %v1610_v25 }
  0xf5   :  { %v226_v40 = vpop.permute.xlu1 %225  ;;  %v224_v41 = vpop.permute.xlu0 %223  ;;  %v1104_v63 = vpack.c.bf16 %v232_v42, %v215_v54  ;;  %v254_v42 = vld [vmem:[#allocation7 + $0x8] sm:$0xff] }
  0xf6   :  { %v231_v44 = vsel %vm227_vm5, %v226_v40, %v220_v22  ;;  %v228_v48 = vsel %vm227_vm5, %v224_v41, %v226_v40  ;;  %v229_v49 = vsel %vm227_vm5, %v222_v19, %v224_v41  ;;  %v253_v41 = vld [vmem:[#allocation7] sm:$0xff] }
  0xf7   :  { %v235_v51 = vmul.f32 %v231_v44, %v1616_v30  ;;  %v233_v52 = vmul.f32 %v229_v49, %v1618_v31  ;;  %v234_v53 = vmul.f32 %v228_v48, %v1620_v32 }
  0xf9   :  { %v239_v56 = vpop.permute.xlu1 %238  ;;  %v237_v58 = vpop.permute.xlu0 %236  ;;  %v1102_v59 = vpack.c.bf16 %v233_v52, %v216_v39  ;;  %v1118_v61 = vpack.c.bf16 %v235_v51, %v218_v38  ;;  %v1120_v62 = vpack.c.bf16 %v234_v53, %v217_v50 }
  0xfa   :  { %v247_v19 = vsel %vm244_vm7, %v237_v58, %v239_v56 }
  0xfb   :  { %1103 = vmatprep.subr.bf16.mxu0 %v1102_v59  ;;  %1119 = vmatprep.subr.bf16.mxu1 %v1118_v61  ;;  %v249_v40 = vmul.f32 %v247_v19, %v1647_v18 }
  0xfc   :  { %1105 = vmatpush1.bf16.msra.mxu0 %v1104_v63  ;;  %1121 = vmatpush1.bf16.msra.mxu1 %v1120_v62 }
  0xfd   :  { %v243_v22 = vpop.permute.xlu1 %242  ;;  %v241_v10 = vpop.permute.xlu0 %240 }
  0xfe   :  { %v248_v8 = vsel %vm244_vm7, %v243_v22, %v237_v58  ;;  %v245_v26 = vsel %vm244_vm7, %v241_v10, %v243_v22  ;;  %v246_v28 = vsel %vm244_vm7, %v239_v56, %v241_v10 }
  0xff   :  { %v252_v37 = vmul.f32 %v248_v8, %v1641_v5  ;;  %v250_v38 = vmul.f32 %v246_v28, %v1643_v9  ;;  %v251_v39 = vmul.f32 %v245_v26, %v1645_v13  ;;  %v432_v13 = vld [vmem:[#allocation8] sm:$0xff] }
 0x101   :  { %278 = vmatprep.subr.mxu0 %v250_v38  ;;  %355 = vmatprep.subr.mxu1 %v252_v37 }
 0x102   :  { %279 = vmatpush1.msra.mxu0 %v249_v40  ;;  %356 = vmatpush1.msra.mxu1 %v251_v39 }
 0x103   :  { %1078 = vmatmul.mubr.msk.f32.vlgmr.msra.gmra.mrb[0].mxu0 %vm255_vm8, %v253_v41  ;;  %1080 = vmatmul.mubr.msk.f32.vlgmr.msra.gmra.mrb[0].mxu1 %vm255_vm8, %v253_v41 }
 0x104   :  { %332 = vmatprep.mubr.f32.mxu0 %v1896_v12  ;;  %409 = vmatprep.mubr.f32.mxu1 %v1896_v12 }
 0x107   :  { %1079 = vmatmul.mubr.msk.f32.gmra.mrb[2].mxu0 %vm255_vm8, %v254_v42  ;;  %1081 = vmatmul.mubr.msk.f32.gmra.mrb[2].mxu1 %vm255_vm8, %v254_v42 }
 0x108   :  { %501 = vmatprep.mubr.f32.mxu0 %v1896_v12  ;;  %572 = vmatprep.mubr.f32.mxu1 %v1896_v12 }
 0x1d6   :  { %v328_v44 = vpop.f32.mrb[0].mxu0  ;;  %v405_v48 = vpop.f32.mrb[0].mxu1 }
 0x1d7   :  { %v330_v49 = vpop.f32.mrb[1].mxu0  ;;  %v407_v50 = vpop.f32.mrb[1].mxu1  ;;  %v416_v51 = vmul.f32 0.2, %v328_v44  ;;  %v418_v52 = vmul.f32 0.2, %v405_v48 }
 0x1d8   :  { %v417_v53 = vmul.f32 0.2, %v330_v49  ;;  %v419_v54 = vmul.f32 0.2, %v407_v50 }
 0x1d9   :  { %v424_v10 = vmax.f32 %v328_v44, %v416_v51  ;;  %v426_v8 = vmax.f32 %v405_v48, %v418_v52  ;;  %v1902_v44 = vmov 0.0  }
 0x1da   :  { %v334_v56 = vpop.f32.mrb[2].mxu0  ;;  %v411_v58 = vpop.f32.mrb[2].mxu1  ;;  %v425_v37 = vmax.f32 %v330_v49, %v417_v53  ;;  %v427_v38 = vmax.f32 %v407_v50, %v419_v54 }
 0x1db   :  { %v420_v59 = vmul.f32 0.2, %v334_v56  ;;  %v422_v61 = vmul.f32 0.2, %v411_v58  ;;  %v336_v62 = vpop.f32.mrb[3].mxu0  ;;  %v413_v63 = vpop.f32.mrb[3].mxu1 }
 0x1dc   :  { %v421_v19 = vmul.f32 0.2, %v336_v62  ;;  %v423_v22 = vmul.f32 0.2, %v413_v63 }
 0x1dd   :  { %v428_v26 = vmax.f32 %v334_v56, %v420_v59  ;;  %v430_v28 = vmax.f32 %v411_v58, %v422_v61 }
 0x1de   :  { %v429_v39 = vmax.f32 %v336_v62, %v421_v19  ;;  %v431_v40 = vmax.f32 %v413_v63, %v423_v22 }
 0x1df   :  { %v1124_v41 = vpack.c.bf16 %v428_v26, %v424_v10  ;;  %v1128_v42 = vpack.c.bf16 %v430_v28, %v426_v8 }
 0x1e0   :  { %v1122_v12 = vpack.c.bf16 %v429_v39, %v425_v37  ;;  %v1126_v5 = vpack.c.bf16 %v431_v40, %v427_v38 }
 0x1e2   :  { %1123 = vmatprep.subr.bf16.mxu0 %v1122_v12  ;;  %1127 = vmatprep.subr.bf16.mxu1 %v1126_v5 }
 0x1e3   :  { %1125 = vmatpush1.bf16.msra.mxu0 %v1124_v41  ;;  %1129 = vmatpush1.bf16.msra.mxu1 %v1128_v42 }
 0x1e6   :  { %1082 = vmatmul.mubr.msk.f32.vlgmr.msra.gmra.mrb[4].mxu0 %vm433_vm9, %v432_v13  ;;  %1083 = vmatmul.mubr.msk.f32.vlgmr.msra.gmra.mrb[4].mxu1 %vm433_vm9, %v432_v13 }
 0x1e7   :  { %792 = vmatprep.mubr.f32.mxu0 %v1902_v44  ;;  %869 = vmatprep.mubr.f32.mxu1 %v1902_v44 }
 0x2b9   :  { %v503_v48 = vpop.f32.mrb[4].mxu0  ;;  %v574_v49 = vpop.f32.mrb[4].mxu1 }
 0x2ba   :  { %v1674_v50 = vadd.f32 %v503_v48, %v1399_v1  ;;  %v505_v51 = vpop.f32.mrb[5].mxu0  ;;  %v1677_v12 = vadd.f32 %v574_v49, %v1397_v0  ;;  %v576_v5 = vpop.f32.mrb[5].mxu1 }
 0x2bb   :  { %v1680_v52 = vadd.f32 %v505_v51, %v1406_v6  ;;  %v1683_v53 = vadd.f32 %v576_v5, %v1401_v2 }
 0x2bc   :  { %v583_v13 = vmul.f32 0.2, %v1674_v50  ;;  %v585_v1 = vmul.f32 0.2, %v1677_v12 }
 0x2bd   :  { %v584_v54 = vmul.f32 0.2, %v1680_v52  ;;  %v586_v0 = vmul.f32 0.2, %v1683_v53 }
 0x2be   :  { %v1688_v56 = vmax.f32 %v1674_v50, %v583_v13  ;;  %v1700_v2 = vmax.f32 %v1677_v12, %v585_v1 }
 0x2bf   :  { %v1692_v58 = vmax.f32 %v1680_v52, %v584_v54  ;;  %v1703_v6 = vmax.f32 %v1683_v53, %v586_v0 }
 0x2c0   :  { %591 = vrot.lane.b32.xlu0 %v1688_v56, %s1314_s3 }
 0x2c1   :  { %593 = vrot.lane.b32.xlu1 %v1692_v58, %s1314_s3 }
 0x2c4   :  { %595 = vrot.lane.b32.xlu0 %v1700_v2, %s1314_s3 }
 0x2c5   :  { %597 = vrot.lane.b32.xlu1 %v1703_v6, %s1314_s3 }
 0x2c8   :  { %607 = vrot.lane.b32.xlu0 %v1688_v56, %s1315_s12 }
 0x2c9   :  { %609 = vrot.lane.b32.xlu1 %v1692_v58, %s1315_s12 }
 0x2cc   :  { %611 = vrot.lane.b32.xlu0 %v1700_v2, %s1315_s12 }
 0x2cd   :  { %613 = vrot.lane.b32.xlu1 %v1703_v6, %s1315_s12 }
 0x2d0   :  { %623 = vrot.lane.b32.xlu0 %v1688_v56, %s1316_s13 }
 0x2d1   :  { %625 = vrot.lane.b32.xlu1 %v1692_v58, %s1316_s13 }
 0x2d4   :  { %627 = vrot.lane.b32.xlu0 %v1700_v2, %s1316_s13 }
 0x2d5   :  { %629 = vrot.lane.b32.xlu1 %v1703_v6, %s1316_s13 }
 0x2d8   :  { %639 = vrot.lane.b32.xlu0 %v1688_v56, %s1317_s1 }
 0x2d9   :  { %641 = vrot.lane.b32.xlu1 %v1692_v58, %s1317_s1 }
 0x2dc   :  { %643 = vrot.lane.b32.xlu0 %v1700_v2, %s1317_s1 }
 0x2dd   :  { %645 = vrot.lane.b32.xlu1 %v1703_v6, %s1317_s1 }
 0x2e0   :  { %655 = vrot.lane.b32.xlu0 %v1688_v56, %s1318_s14 }
 0x2e1   :  { %657 = vrot.lane.b32.xlu1 %v1692_v58, %s1318_s14 }
 0x2e4   :  { %659 = vrot.lane.b32.xlu0 %v1700_v2, %s1318_s14 }
 0x2e5   :  { %661 = vrot.lane.b32.xlu1 %v1703_v6, %s1318_s14 }
 0x2e8   :  { %671 = vrot.lane.b32.xlu0 %v1688_v56, %s1319_s15 }
 0x2e9   :  { %673 = vrot.lane.b32.xlu1 %v1692_v58, %s1319_s15 }
 0x2ec   :  { %675 = vrot.lane.b32.xlu0 %v1700_v2, %s1319_s15 }
 0x2ed   :  { %677 = vrot.lane.b32.xlu1 %v1703_v6, %s1319_s15 }
 0x2f0   :  { %687 = vrot.lane.b32.xlu0 %v1688_v56, %s1320_s16 }
 0x2f1   :  { %689 = vrot.lane.b32.xlu1 %v1692_v58, %s1320_s16 }
 0x2f4   :  { %691 = vrot.lane.b32.xlu0 %v1700_v2, %s1320_s16 }
 0x2f5   :  { %693 = vrot.lane.b32.xlu1 %v1703_v6, %s1320_s16 }
 0x2f8   :  { %703 = vrot.lane.b32.xlu0 %v1688_v56, %s1322_s17 }
 0x2f9   :  { %705 = vrot.lane.b32.xlu1 %v1692_v58, %s1322_s17 }
 0x2fc   :  { %707 = vrot.lane.b32.xlu0 %v1700_v2, %s1322_s17 }
 0x2fd   :  { %709 = vrot.lane.b32.xlu1 %v1703_v6, %s1322_s17 }
 0x332   :  { %v592_v59 = vpop.permute.xlu0 %591 }
 0x333   :  { %v594_v61 = vpop.permute.xlu1 %593 }
 0x334   :  { %v601_v19 = vsel %vm125_vm0, %v592_v59, %v594_v61 }
 0x335   :  { %v604_v26 = vmul.f32 %v601_v19, %v1493_v20 }
 0x336   :  { %v596_v62 = vpop.permute.xlu0 %595 }
 0x337   :  { %v598_v63 = vpop.permute.xlu1 %597  ;;  %v600_v40 = vsel %vm125_vm0, %v594_v61, %v596_v62 }
 0x338   :  { %v599_v37 = vsel %vm125_vm0, %v596_v62, %v598_v63  ;;  %v602_v38 = vsel %vm125_vm0, %v598_v63, %v592_v59  ;;  %v605_v1 = vmul.f32 %v600_v40, %v1503_v27 }
 0x339   :  { %v603_v51 = vmul.f32 %v602_v38, %v1497_v24  ;;  %v606_v5 = vmul.f32 %v599_v37, %v1515_v34 }
 0x33a   :  { %v608_v22 = vpop.permute.xlu0 %607 }
 0x33b   :  { %v610_v10 = vpop.permute.xlu1 %609 }
 0x33c   :  { %v617_v8 = vsel %vm142_vm1, %v608_v22, %v610_v10 }
 0x33d   :  { %v620_v28 = vmul.f32 %v617_v8, %v1495_v21 }
 0x33e   :  { %v612_v39 = vpop.permute.xlu0 %611 }
 0x33f   :  { %v616_v41 = vsel %vm142_vm1, %v610_v10, %v612_v39  ;;  %v614_v42 = vpop.permute.xlu1 %613  ;;  %v1130_v48 = vpack.c.bf16 %v620_v28, %v604_v26 }
 0x340   :  { %v621_v49 = vmul.f32 %v616_v41, %v1513_v33  ;;  %v615_v20 = vsel %vm142_vm1, %v612_v39, %v614_v42  ;;  %v618_v21 = vsel %vm142_vm1, %v614_v42, %v608_v22 }
 0x341   :  { %v619_v13 = vmul.f32 %v618_v21, %v1507_v29  ;;  %v622_v54 = vmul.f32 %v615_v20, %v1517_v35  ;;  %1131 = vmatprep.subr.bf16.mxu0 %v1130_v48 }
 0x342   :  { %v624_v0 = vpop.permute.xlu0 %623  ;;  %v1148_v62 = vpack.c.bf16 %v621_v49, %v605_v1 }
 0x343   :  { %v1132_v59 = vpack.c.bf16 %v619_v13, %v603_v51  ;;  %v626_v33 = vpop.permute.xlu1 %625  ;;  %v1146_v61 = vpack.c.bf16 %v622_v54, %v606_v5 }
 0x344   :  { %v633_v24 = vsel %vm159_vm2, %v624_v0, %v626_v33 }
 0x345   :  { %1133 = vmatpush1.bf16.msra.mxu0 %v1132_v59  ;;  %1147 = vmatprep.subr.bf16.mxu1 %v1146_v61  ;;  %v636_v27 = vmul.f32 %v633_v24, %v1533_v55 }
 0x346   :  { %v628_v63 = vpop.permute.xlu0 %627  ;;  %1149 = vmatpush1.bf16.msra.mxu1 %v1148_v62 }
 0x347   :  { %v630_v19 = vpop.permute.xlu1 %629  ;;  %v632_v28 = vsel %vm159_vm2, %v626_v33, %v628_v63 }
 0x348   :  { %v631_v10 = vsel %vm159_vm2, %v628_v63, %v630_v19  ;;  %v634_v8 = vsel %vm159_vm2, %v630_v19, %v624_v0  ;;  %v637_v20 = vmul.f32 %v632_v28, %v1546_v3 }
 0x349   :  { %v635_v41 = vmul.f32 %v634_v8, %v1539_v60  ;;  %v638_v42 = vmul.f32 %v631_v10, %v1548_v4 }
 0x34a   :  { %v640_v34 = vpop.permute.xlu0 %639 }
 0x34b   :  { %v642_v29 = vpop.permute.xlu1 %641 }
 0x34c   :  { %v649_v35 = vsel %vm176_vm3, %v640_v34, %v642_v29 }
 0x34d   :  { %v652_v22 = vmul.f32 %v649_v35, %v1537_v57 }
 0x34e   :  { %v644_v26 = vpop.permute.xlu0 %643 }
 0x34f   :  { %v648_v37 = vsel %vm176_vm3, %v642_v29, %v644_v26  ;;  %v646_v38 = vpop.permute.xlu1 %645  ;;  %v1134_v39 = vpack.c.bf16 %v652_v22, %v636_v27 }
 0x350   :  { %v653_v40 = vmul.f32 %v648_v37, %v1557_v15  ;;  %v647_v55 = vsel %vm176_vm3, %v644_v26, %v646_v38  ;;  %v650_v57 = vsel %vm176_vm3, %v646_v38, %v640_v34 }
 0x351   :  { %v651_v48 = vmul.f32 %v650_v57, %v1555_v14  ;;  %v654_v49 = vmul.f32 %v647_v55, %v1559_v17  ;;  %1135 = vmatprep.subr.bf16.mxu0 %v1134_v39 }
 0x352   :  { %v656_v21 = vpop.permute.xlu0 %655  ;;  %v1152_v13 = vpack.c.bf16 %v653_v40, %v637_v20 }
 0x353   :  { %v1136_v51 = vpack.c.bf16 %v651_v48, %v635_v41  ;;  %v658_v15 = vpop.permute.xlu1 %657  ;;  %v1150_v5 = vpack.c.bf16 %v654_v49, %v638_v42 }
 0x354   :  { %v665_v54 = vsel %vm193_vm4, %v656_v21, %v658_v15 }
 0x355   :  { %1137 = vmatpush1.bf16.msra.mxu0 %v1136_v51  ;;  %1151 = vmatprep.subr.bf16.mxu1 %v1150_v5  ;;  %v667_v4 = vmul.f32 %v665_v54, %v1574_v43  ;;  %v1903_v51 = vld [vmem:[#allocation16_spill] sm:$0xff]  ;;  %v1904_v5 = vld [vmem:[#allocation15_spill] sm:$0xff] }
 0x356   :  { %v660_v60 = vpop.permute.xlu0 %659  ;;  %1153 = vmatpush1.bf16.msra.mxu1 %v1152_v13  ;;  %v720_v54 = vld [vmem:[#allocation7 + $0x10] sm:$0xff] }
 0x357   :  { %v664_v14 = vsel %vm193_vm4, %v658_v15, %v660_v60  ;;  %v662_v17 = vpop.permute.xlu1 %661  ;;  %v1140_v43 = vpack.c.bf16 %v667_v4, %v1688_v56 }
 0x358   :  { %v668_v3 = vmul.f32 %v664_v14, %v1580_v46  ;;  %v663_v1 = vsel %vm193_vm4, %v660_v60, %v662_v17  ;;  %v666_v0 = vsel %vm193_vm4, %v662_v17, %v656_v21 }
 0x359   :  { %v669_v59 = vmul.f32 %v663_v1, %v1582_v47  ;;  %v670_v33 = vmul.f32 %v666_v0, %v1578_v45 }
 0x35a   :  { %v672_v61 = vpop.permute.xlu0 %671  ;;  %v1138_v62 = vpack.c.bf16 %v668_v3, %v1692_v58 }
 0x35b   :  { %v1156_v63 = vpack.c.bf16 %v669_v59, %v1700_v2  ;;  %v674_v19 = vpop.permute.xlu1 %673  ;;  %v1154_v46 = vpack.c.bf16 %v670_v33, %v1703_v6 }
 0x35c   :  { %1139 = vmatprep.subr.bf16.mxu0 %v1138_v62  ;;  %v681_v45 = vsel %vm210_vm6, %v672_v61, %v674_v19 }
 0x35d   :  { %1141 = vmatpush1.bf16.msra.mxu0 %v1140_v43  ;;  %1155 = vmatprep.subr.bf16.mxu1 %v1154_v46  ;;  %v683_v27 = vmul.f32 %v681_v45, %v1622_v36 }
 0x35e   :  { %v676_v24 = vpop.permute.xlu0 %675  ;;  %1157 = vmatpush1.bf16.msra.mxu1 %v1156_v63 }
 0x35f   :  { %v678_v34 = vpop.permute.xlu1 %677  ;;  %v680_v56 = vsel %vm210_vm6, %v674_v19, %v676_v24 }
 0x360   :  { %v679_v2 = vsel %vm210_vm6, %v676_v24, %v678_v34  ;;  %v682_v6 = vsel %vm210_vm6, %v678_v34, %v672_v61  ;;  %v684_v26 = vmul.f32 %v680_v56, %v1604_v7 }
 0x361   :  { %v685_v39 = vmul.f32 %v679_v2, %v1608_v11  ;;  %v686_v36 = vmul.f32 %v682_v6, %v1600_v23 }
 0x362   :  { %v688_v29 = vpop.permute.xlu0 %687 }
 0x363   :  { %v690_v47 = vpop.permute.xlu1 %689 }
 0x364   :  { %v697_v58 = vsel %vm227_vm5, %v688_v29, %v690_v47 }
 0x365   :  { %v699_v22 = vmul.f32 %v697_v58, %v1610_v25 }
 0x366   :  { %v692_v35 = vpop.permute.xlu0 %691 }
 0x367   :  { %v696_v10 = vsel %vm227_vm5, %v690_v47, %v692_v35  ;;  %v694_v8 = vpop.permute.xlu1 %693  ;;  %v1144_v41 = vpack.c.bf16 %v699_v22, %v683_v27  ;;  %v899_v27 = vld [vmem:[#allocation8 + $0x8] sm:$0xff] }
 0x368   :  { %v700_v28 = vmul.f32 %v696_v10, %v1618_v31  ;;  %v695_v37 = vsel %vm227_vm5, %v692_v35, %v694_v8  ;;  %v698_v38 = vsel %vm227_vm5, %v694_v8, %v688_v29 }
 0x369   :  { %v701_v25 = vmul.f32 %v695_v37, %v1620_v32  ;;  %v702_v40 = vmul.f32 %v698_v38, %v1616_v30 }
 0x36a   :  { %v704_v55 = vpop.permute.xlu0 %703  ;;  %v1142_v57 = vpack.c.bf16 %v700_v28, %v684_v26 }
 0x36b   :  { %v1160_v7 = vpack.c.bf16 %v701_v25, %v685_v39  ;;  %v706_v42 = vpop.permute.xlu1 %705  ;;  %v1158_v31 = vpack.c.bf16 %v702_v40, %v686_v36 }
 0x36c   :  { %1143 = vmatprep.subr.bf16.mxu0 %v1142_v57  ;;  %v713_v48 = vsel %vm244_vm7, %v704_v55, %v706_v42 }
 0x36d   :  { %1145 = vmatpush1.bf16.msra.mxu0 %v1144_v41  ;;  %1159 = vmatprep.subr.bf16.mxu1 %v1158_v31  ;;  %v715_v21 = vmul.f32 %v713_v48, %v1647_v18 }
 0x36e   :  { %v708_v49 = vpop.permute.xlu0 %707  ;;  %1161 = vmatpush1.bf16.msra.mxu1 %v1160_v7 }
 0x36f   :  { %v712_v23 = vsel %vm244_vm7, %v706_v42, %v708_v49  ;;  %v710_v11 = vpop.permute.xlu1 %709 }
 0x370   :  { %v716_v30 = vmul.f32 %v712_v23, %v1643_v9  ;;  %v711_v32 = vsel %vm244_vm7, %v708_v49, %v710_v11  ;;  %v714_v20 = vsel %vm244_vm7, %v710_v11, %v704_v55  ;;  %v721_v9 = vld [vmem:[#allocation7 + $0x18] sm:$0xff] }
 0x371   :  { %v717_v15 = vmul.f32 %v711_v32, %v1903_v51  ;;  %v718_v13 = vmul.f32 %v714_v20, %v1904_v5 }
 0x372   :  { %744 = vmatprep.subr.mxu0 %v716_v30 }
 0x373   :  { %745 = vmatpush1.msra.mxu0 %v715_v21  ;;  %821 = vmatprep.subr.mxu1 %v718_v13 }
 0x374   :  { %1084 = vmatmul.mubr.msk.f32.vlgmr.msra.gmra.mrb[6].mxu0 %vm255_vm8, %v720_v54  ;;  %822 = vmatpush1.msra.mxu1 %v717_v15 }
 0x375   :  { %1086 = vmatmul.mubr.msk.f32.vlgmr.msra.gmra.mrb[6].mxu1 %vm255_vm8, %v720_v54  ;;  %798 = vmatprep.mubr.f32.mxu0 %v1902_v44 }
 0x376   :  { %875 = vmatprep.mubr.f32.mxu1 %v1902_v44 }
 0x378   :  { %1085 = vmatmul.mubr.msk.f32.gmra.mrb[8].mxu0 %vm255_vm8, %v721_v9 }
 0x379   :  { %1087 = vmatmul.mubr.msk.f32.gmra.mrb[8].mxu1 %vm255_vm8, %v721_v9  ;;  %967 = vmatprep.mubr.f32.mxu0 %v1902_v44 }
 0x37a   :  { %1038 = vmatprep.mubr.f32.mxu1 %v1902_v44 }
 0x447   :  { %v794_v16 = vpop.f32.mrb[6].mxu0 }
 0x448   :  { %v796_v18 = vpop.f32.mrb[7].mxu0  ;;  %v871_v60 = vpop.f32.mrb[6].mxu1  ;;  %v882_v14 = vmul.f32 0.2, %v794_v16 }
 0x449   :  { %v873_v4 = vpop.f32.mrb[7].mxu1  ;;  %v883_v17 = vmul.f32 0.2, %v796_v18  ;;  %v884_v3 = vmul.f32 0.2, %v871_v60 }
 0x44a   :  { %v885_v0 = vmul.f32 0.2, %v873_v4  ;;  %v890_v19 = vmax.f32 %v794_v16, %v882_v14 }
 0x44b   :  { %v800_v1 = vpop.f32.mrb[8].mxu0  ;;  %v891_v34 = vmax.f32 %v796_v18, %v883_v17  ;;  %v892_v44 = vmax.f32 %v871_v60, %v884_v3 }
 0x44c   :  { %v886_v59 = vmul.f32 0.2, %v800_v1  ;;  %v802_v33 = vpop.f32.mrb[9].mxu0  ;;  %v877_v61 = vpop.f32.mrb[8].mxu1  ;;  %v893_v45 = vmax.f32 %v873_v4, %v885_v0 }
 0x44d   :  { %v887_v62 = vmul.f32 0.2, %v802_v33  ;;  %v888_v43 = vmul.f32 0.2, %v877_v61  ;;  %v879_v63 = vpop.f32.mrb[9].mxu1 }
 0x44e   :  { %v894_v46 = vmax.f32 %v800_v1, %v886_v59  ;;  %v889_v24 = vmul.f32 0.2, %v879_v63 }
 0x44f   :  { %v895_v29 = vmax.f32 %v802_v33, %v887_v62  ;;  %v896_v47 = vmax.f32 %v877_v61, %v888_v43 }
 0x450   :  { %v1164_v58 = vpack.c.bf16 %v894_v46, %v890_v19  ;;  %v897_v56 = vmax.f32 %v879_v63, %v889_v24 }
 0x451   :  { %v1162_v2 = vpack.c.bf16 %v895_v29, %v891_v34  ;;  %v1168_v6 = vpack.c.bf16 %v896_v47, %v892_v44 }
 0x452   :  { %v1166_v35 = vpack.c.bf16 %v897_v56, %v893_v45 }
 0x453   :  { %1163 = vmatprep.subr.bf16.mxu0 %v1162_v2 }
 0x454   :  { %1165 = vmatpush1.bf16.msra.mxu0 %v1164_v58  ;;  %1167 = vmatprep.subr.bf16.mxu1 %v1166_v35 }
 0x455   :  { %1169 = vmatpush1.bf16.msra.mxu1 %v1168_v6 }
 0x457   :  { %1088 = vmatmul.mubr.msk.f32.vlgmr.msra.gmra.mrb[10].mxu0 %vm433_vm9, %v899_v27 }
 0x458   :  { %1089 = vmatmul.mubr.msk.f32.vlgmr.msra.gmra.mrb[10].mxu1 %vm433_vm9, %v899_v27 }
 0x52a   :  { %v969_v22 = vpop.f32.mrb[10].mxu0 }
 0x52b   :  { %v1045_v10 = vadd.f32 %v969_v22, %v1674_v50  ;;  %v971_v8 = vpop.f32.mrb[11].mxu0  ;;  %v1040_v26 = vpop.f32.mrb[10].mxu1 }
 0x52c   :  { %v1046_v28 = vadd.f32 %v971_v8, %v1680_v52  ;;  %v1047_v37 = vadd.f32 %v1040_v26, %v1677_v12  ;;  %v1042_v38 = vpop.f32.mrb[11].mxu1 }
 0x52d   :  { %v1049_v39 = vmul.f32 0.2, %v1045_v10  ;;  %v1048_v36 = vadd.f32 %v1042_v38, %v1683_v53 }
 0x52e   :  { %v1050_v25 = vmul.f32 0.2, %v1046_v28  ;;  %v1051_v40 = vmul.f32 0.2, %v1047_v37 }
 0x52f   :  { %v1053_v55 = vmax.f32 %v1045_v10, %v1049_v39  ;;  %v1052_v57 = vmul.f32 0.2, %v1048_v36 }
 0x530   :  { %v1054_v41 = vmax.f32 %v1046_v28, %v1050_v25  ;;  %v1055_v7 = vmax.f32 %v1047_v37, %v1051_v40 }
 0x531   :  { %1057 = vst [vmem:[#allocation10] sm:$0xff] %v1053_v55  ;;  %v1056_v50 = vmax.f32 %v1048_v36, %v1052_v57 }
 0x532   :  { %1058 = vst [vmem:[#allocation10 + $0x8] sm:$0xff] %v1054_v41  ;;  %1059 = vst [vmem:[#allocation10 + $0x10] sm:$0xff] %v1055_v7 }
 0x533   :  { %1060 = vst [vmem:[#allocation10 + $0x18] sm:$0xff] %v1056_v50 }
 0x534   :  { %1287 = shalt.err (!%p1284_p8)
}
 0x535   :  { %s1288_s23 = scalar_lea.hbm %s1895_s4, 512 }
 0x536   :  { %p1289_p9 = scmp.ne.s32.totalorder %s1895_s4, %s1288_s23  ;;  %p1292_p10 = scmp.lt.u32.totalorder %s1288_s23, %s1895_s4 }
 0x538   :  { %p1294_p11 = pnand %p1292_p10, %p1289_p9 }
 0x53a   :  { %1297 = shalt.err (!%p1294_p11)
}
 0x53b   :  { %1070 = dma.vmem_to_hbm [thread:$0]  %s1068_s19, 512, %s1895_s4, [#allocation4]  }
 0x53c   :  { %1304 = dma.done.wait [#allocation4], 512  }
 0x53d   :  { %1305 = vsyncadd [#allocation4], 4294966784 }
 0x53e   :  { %1074 = vsyncpa [#allocation3], 1 }
 0x53f   :  { %1075 = vsyncpa [#allocation6], 1 }
 0x540   :  { %1076 = vsyncpa [#allocation9], 1 }
 0x541   :  { %1077 = vsyncpa [#allocation4], 1 }

</bundles_post_ra>
